<compile_context>
chip_gen: v5e
topology: v5e:2x2
jax: 0.10.0
libtpu: 0.0.40
codegen_flags: <defaults>
</compile_context>

<pallas_src>
import functools

import jax
import jax.numpy as jnp
from jax.experimental import pallas as pl
from jax.experimental.pallas import tpu as pltpu


def mlp_kernel(x_ref, w1_ref, b1_ref, w2_ref, b2_ref, o_ref):
    # hidden = relu(x @ W1 + b1)   (MXU matmul, f32 accumulation; f32 epilogue)
    h = jnp.dot(x_ref[...], w1_ref[...], preferred_element_type=jnp.float32)
    h = jnp.maximum(h + b1_ref[...], 0.0)          # b1 is (1, H) f32, broadcasts over batch
    # out = hidden @ W2 + b2
    out = jnp.dot(h.astype(w2_ref.dtype), w2_ref[...],
                  preferred_element_type=jnp.float32)
    o_ref[...] = (out + b2_ref[...]).astype(o_ref.dtype)   # b2 is (1, O) f32


def _round_up(x, m):
    return ((x + m - 1) // m) * m


def _default_compute_dtype(x_dtype):
    # v5e's MXU is bf16-native (f32 operands take a slow multi-pass path); elsewhere keep f32.
    try:
        kind = jax.devices()[0].device_kind.lower()
    except Exception:  # pragma: no cover - e.g. no devices during tracing tools
        kind = ""
    if "v5 lite" in kind or "v5e" in kind:
        return jnp.bfloat16
    return x_dtype


@functools.partial(jax.jit, static_argnames=("block_b", "compute_dtype"))
def mlp_forward(x, w1, b1, w2, b2, *, block_b=512, compute_dtype=None):
    """Fused Linear->ReLU->Linear.  Only the batch axis is tiled over the grid."""
    B, F = x.shape
    F2, H = w1.shape
    H2, O = w2.shape
    assert F2 == F and H2 == H and b1.shape == (H,) and b2.shape == (O,)

    if compute_dtype is None:
        compute_dtype = _default_compute_dtype(x.dtype)
    out_dtype = x.dtype

    # Batch tile: multiple of 8 (sublane), clamped so small batches run as ONE grid step.
    TB = _round_up(min(block_b, _round_up(B, 8)), 8)
    Bp = _round_up(B, TB)
    num_steps = Bp // TB

    # Operands: only the batch axis is ever zero-padded (extra rows compute garbage that is
    # sliced off below).  Feature / hidden / output dims are passed unpadded; their block dims
    # equal the full array dims, so Mosaic handles the sub-128 lanes with masked loads/stores.
    xp = x.astype(compute_dtype)
    if Bp != B:
        xp = jnp.zeros((Bp, F), compute_dtype).at[:B, :].set(xp)
    w1c = w1.astype(compute_dtype)
    w2c = w2.astype(compute_dtype)
    # Biases stay f32: f32 bias-add / ReLU epilogue (cheap everywhere, avoids missing bf16 VPU
    # on v5e) and exact accumulation.
    b1c = b1.astype(jnp.float32).reshape(1, H)
    b2c = b2.astype(jnp.float32).reshape(1, O)

    # Only split across the 2 TCs (v7x) when each core gets real work; otherwise the per-TC
    # weight reload + core sync dominates.  No-op on single-TC v5e/v6e.
    if num_steps >= 2 and TB >= 256:
        dim_sem = ("parallel",)
    else:
        dim_sem = ("arbitrary",)

    out_padded = pl.pallas_call(
        mlp_kernel,
        out_shape=jax.ShapeDtypeStruct((Bp, O), out_dtype),
        grid_spec=pltpu.PrefetchScalarGridSpec(
            num_scalar_prefetch=0,
            grid=(num_steps,),
            in_specs=[
                # x: one (TB, F) batch tile per grid step -> double-buffered DMA.
                pl.BlockSpec((TB, F), lambda i: (i, 0)),
                # Weights / biases: constant index_map -> loaded once, resident in VMEM.
                # (They are tiny here, so default double-buffering of them is harmless.)
                pl.BlockSpec((F, H), lambda i: (0, 0)),
                pl.BlockSpec((1, H), lambda i: (0, 0)),
                pl.BlockSpec((H, O), lambda i: (0, 0)),
                pl.BlockSpec((1, O), lambda i: (0, 0)),
            ],
            out_specs=pl.BlockSpec((TB, O), lambda i: (i, 0)),
        ),
        compiler_params=pltpu.CompilerParams(
            dimension_semantics=dim_sem,
            # Resident weights + double-buffered (TB, F)/(TB, O) tiles stay far below this
            # even on v7x's 64 MiB VMEM for any reasonable TB at these model dims.
            vmem_limit_bytes=32 * 1024 * 1024,
        ),
    )(xp, w1c, b1c, w2c, b2c)

    return out_padded[:B, :]


def init_linear_params(key, fan_in, fan_out, dtype=jnp.float32):
    # Mirror torch.nn.Linear default init: U(-1/sqrt(fan_in), 1/sqrt(fan_in)).
    kw, kb = jax.random.split(key)
    bound = 1.0 / jnp.sqrt(float(fan_in))
    # Stored as (fan_in, fan_out) == transpose of torch's (out, in) weight.
    w = jax.random.uniform(kw, (fan_in, fan_out), dtype, -bound, bound)
    b = jax.random.uniform(kb, (fan_out,), dtype, -bound, bound)
    return w, b


if __name__ == "__main__":
    n_feature, n_hidden, n_output = 16, 32, 8
    batch = 64

    key = jax.random.PRNGKey(0)
    kx, k1, k2 = jax.random.split(key, 3)

    x = jax.random.normal(kx, (batch, n_feature), jnp.float32)
    w1, b1 = init_linear_params(k1, n_feature, n_hidden)
    w2, b2 = init_linear_params(k2, n_hidden, n_output)

    # Reference: same math as the torch forward (Linear -> ReLU -> Linear).
    ref = jnp.maximum(x @ w1 + b1, 0.0) @ w2 + b2

    # Default path: single grid step (TB == round_up(B, 8) == 64), unpadded F/H/O.
    out = jax.block_until_ready(mlp_forward(x, w1, b1, w2, b2, compute_dtype=jnp.float32))
    assert out.shape == (batch, n_output)
    assert jnp.allclose(out, ref, atol=1e-5, rtol=1e-5)

    # Non-multiple-of-8 batch: exercises the batch zero-pad + slice path.
    B2 = 50
    out2 = jax.block_until_ready(
        mlp_forward(x[:B2], w1, b1, w2, b2, compute_dtype=jnp.float32))
    assert out2.shape == (B2, n_output)
    assert jnp.allclose(out2, ref[:B2], atol=1e-5, rtol=1e-5)

    # bf16-operand path (MXU-friendly; default on v5e): f32 accumulation + f32 epilogue.
    out_bf16 = jax.block_until_ready(
        mlp_forward(x, w1, b1, w2, b2, compute_dtype=jnp.bfloat16))
    assert out_bf16.shape == (batch, n_output)
    assert jnp.allclose(out_bf16, ref, atol=5e-2, rtol=5e-2)

    print("KERNEL_OK")
</pallas_src>

<mosaic_0001>
module attributes {stable_mosaic.version = 11 : i64} {
  func.func @mlp_kernel(%arg0: i32, %arg1: memref<64x16xf32, #tpu.memory_space<vmem>>, %arg2: memref<16x32xf32, #tpu.memory_space<vmem>>, %arg3: memref<1x32xf32, #tpu.memory_space<vmem>>, %arg4: memref<32x8xf32, #tpu.memory_space<vmem>>, %arg5: memref<1x8xf32, #tpu.memory_space<vmem>>, %arg6: memref<64x8xf32, #tpu.memory_space<vmem>>) attributes {dimension_semantics = [#tpu.dimension_semantics<arbitrary>], iteration_bounds = array<i64: 1>, scalar_prefetch = 0 : i64, scratch_operands = 0 : i64, tpu.core_type = #tpu.core_type<tc>, window_params = [{transform_indices = @transform_0, window_bounds = array<i64: 64, 16>}, {pipeline_mode = #tpu.pipeline_mode<synchronous>, transform_indices = @transform_1, window_bounds = array<i64: 16, 32>}, {pipeline_mode = #tpu.pipeline_mode<synchronous>, transform_indices = @transform_2, window_bounds = array<i64: 1, 32>}, {pipeline_mode = #tpu.pipeline_mode<synchronous>, transform_indices = @transform_3, window_bounds = array<i64: 32, 8>}, {pipeline_mode = #tpu.pipeline_mode<synchronous>, transform_indices = @transform_4, window_bounds = array<i64: 1, 8>}, {transform_indices = @transform_5, window_bounds = array<i64: 64, 8>}]} {
    %c0 = arith.constant 0 : index
    %c0_0 = arith.constant 0 : index
    %0 = vector.load %arg1[%c0, %c0_0] : memref<64x16xf32, #tpu.memory_space<vmem>>, vector<64x16xf32>
    %c0_1 = arith.constant 0 : index
    %c0_2 = arith.constant 0 : index
    %1 = vector.load %arg2[%c0_1, %c0_2] : memref<16x32xf32, #tpu.memory_space<vmem>>, vector<16x32xf32>
    %cst = arith.constant dense<0.000000e+00> : vector<64x32xf32>
    %2 = tpu.matmul %0, %1, %cst {dimension_numbers = #tpu.dot_dimension_numbers<[1], [0], [0], [1], [0, 0, 1, 1], [], []>} : vector<64x16xf32>, vector<16x32xf32>, vector<64x32xf32> -> vector<64x32xf32>
    %c0_3 = arith.constant 0 : index
    %c0_4 = arith.constant 0 : index
    %3 = vector.load %arg3[%c0_3, %c0_4] : memref<1x32xf32, #tpu.memory_space<vmem>>, vector<1x32xf32>
    %4 = vector.broadcast %3 : vector<1x32xf32> to vector<64x32xf32>
    %5 = arith.addf %2, %4 : vector<64x32xf32>
    %cst_5 = arith.constant 0.000000e+00 : f32
    %6 = vector.broadcast %cst_5 : f32 to vector<64x32xf32>
    %7 = arith.maximumf %5, %6 : vector<64x32xf32>
    %c0_6 = arith.constant 0 : index
    %c0_7 = arith.constant 0 : index
    %8 = vector.load %arg4[%c0_6, %c0_7] : memref<32x8xf32, #tpu.memory_space<vmem>>, vector<32x8xf32>
    %cst_8 = arith.constant dense<0.000000e+00> : vector<64x8xf32>
    %9 = tpu.matmul %7, %8, %cst_8 {dimension_numbers = #tpu.dot_dimension_numbers<[1], [0], [0], [1], [0, 0, 1, 1], [], []>} : vector<64x32xf32>, vector<32x8xf32>, vector<64x8xf32> -> vector<64x8xf32>
    %c0_9 = arith.constant 0 : index
    %c0_10 = arith.constant 0 : index
    %10 = vector.load %arg5[%c0_9, %c0_10] : memref<1x8xf32, #tpu.memory_space<vmem>>, vector<1x8xf32>
    %11 = vector.broadcast %10 : vector<1x8xf32> to vector<64x8xf32>
    %12 = arith.addf %9, %11 : vector<64x8xf32>
    %c0_11 = arith.constant 0 : index
    %c0_12 = arith.constant 0 : index
    %13 = vector.load %arg6[%c0_11, %c0_12] : memref<64x8xf32, #tpu.memory_space<vmem>>, vector<64x8xf32>
    tpu.vector_store %arg6[%c0_11, %c0_12], %12 {strides = array<i32>} : memref<64x8xf32, #tpu.memory_space<vmem>>, vector<64x8xf32>,
    return
  }
  func.func @transform_0(%arg0: i32) -> (i32, i32) {
    %c0_i32 = arith.constant 0 : i32
    %c0_i32_0 = arith.constant 0 : i32
    return %arg0, %c0_i32 : i32, i32
  }
  func.func @transform_1(%arg0: i32) -> (i32, i32) {
    %c0_i32 = arith.constant 0 : i32
    %c0_i32_0 = arith.constant 0 : i32
    %c0_i32_1 = arith.constant 0 : i32
    return %c0_i32, %c0_i32_0 : i32, i32
  }
  func.func @transform_2(%arg0: i32) -> (i32, i32) {
    %c0_i32 = arith.constant 0 : i32
    %c0_i32_0 = arith.constant 0 : i32
    %c0_i32_1 = arith.constant 0 : i32
    return %c0_i32, %c0_i32_0 : i32, i32
  }
  func.func @transform_3(%arg0: i32) -> (i32, i32) {
    %c0_i32 = arith.constant 0 : i32
    %c0_i32_0 = arith.constant 0 : i32
    %c0_i32_1 = arith.constant 0 : i32
    return %c0_i32, %c0_i32_0 : i32, i32
  }
  func.func @transform_4(%arg0: i32) -> (i32, i32) {
    %c0_i32 = arith.constant 0 : i32
    %c0_i32_0 = arith.constant 0 : i32
    %c0_i32_1 = arith.constant 0 : i32
    return %c0_i32, %c0_i32_0 : i32, i32
  }
  func.func @transform_5(%arg0: i32) -> (i32, i32) {
    %c0_i32 = arith.constant 0 : i32
    %c0_i32_0 = arith.constant 0 : i32
    return %arg0, %c0_i32 : i32, i32
  }
}

</mosaic_0001>

<bundles_post_ra>
// kernel: mlp_forward.1
= control target key start
LH: loop header
LB: loop body
LE: loop exit
PB: predicated region body
PF: predicated region fallthrough
CT: control target
= control target key end

     0   :  { %vm34_vm0 = vcmask 130048   ;;  %vm116_vm1 = vcmask 261120   ;;  %vm182_vm2 = vcmask 64512   ;;  %s345_s1 = inlined_call_operand.vmem [shape: f32[16,32], index: 1, kind: input, shape index: {}]   ;;  %s346_s0 = inlined_call_operand.vmem [shape: f32[64,16], index: 0, kind: input, shape index: {}]   ;;  %s347_s2 = inlined_call_operand.vmem [shape: f32[1,32], index: 2, kind: input, shape index: {}]   ;;  %s348_s3 = inlined_call_operand.vmem [shape: f32[32,8], index: 3, kind: input, shape index: {}]   ;;  %s349_s4 = inlined_call_operand.vmem [shape: f32[1,8], index: 4, kind: input, shape index: {}]   ;;  %s350_s5 = inlined_call_operand.vmem [shape: f32[64,8], index: 5, kind: output, shape index: {}]  }
   0x1   :  { %v29_v0 = vld [vmem:[%s345_s1 + $0x8] sm:$0xff]  ;;  %v28_v1 = vld [vmem:[%s345_s1] sm:$0xff]  ;;  %v111_v4 = vld [vmem:[%s348_s3 + $0x18] sm:$0xff] }
   0x2   :  { %73 = vmatpush.msra.mxu0 %v29_v0  ;;  %v20_v2 = vld [vmem:[%s346_s0] sm:$0xff]  ;;  %211 = vmatpush.msra.mxu3 %v29_v0  ;;  %v25_v3 = vld [vmem:[%s346_s0 + $0x28] sm:$0xff]  ;;  %v26_v6 = vld [vmem:[%s346_s0 + $0x30] sm:$0xff] }
   0x3   :  { %153 = vmatpush.msra.mxu1 %v111_v4  ;;  %213 = vmatpush.msra.mxu2 %v111_v4  ;;  %v21_v5 = vld [vmem:[%s346_s0 + $0x8] sm:$0xff]  ;;  %v22_v7 = vld [vmem:[%s346_s0 + $0x10] sm:$0xff]  ;;  %v27_v8 = vld [vmem:[%s346_s0 + $0x38] sm:$0xff] }
   0x4   :  { %74 = vmatpush.msra.mxu0 %v28_v1  ;;  %212 = vmatpush.msra.mxu3 %v28_v1  ;;  %v23_v9 = vld [vmem:[%s346_s0 + $0x18] sm:$0xff]  ;;  %v24_v10 = vld [vmem:[%s346_s0 + $0x20] sm:$0xff]  ;;  %v110_v11 = vld [vmem:[%s348_s3 + $0x10] sm:$0xff] }
   0x5   :  { %195 = vmatmul.msk.f32.vlgmr.msra.gmra.mxu0 %vm34_vm0, %v20_v2  ;;  %200 = vmatmul.msk.f32.vlgmr.msra.gmra.mxu3 %vm34_vm0, %v25_v3  ;;  %v109_v12 = vld [vmem:[%s348_s3 + $0x8] sm:$0xff]  ;;  %v108_v13 = vld [vmem:[%s348_s3] sm:$0xff] }
   0x6   :  { %154 = vmatpush.msra.mxu1 %v110_v11  ;;  %214 = vmatpush.msra.mxu2 %v110_v11  ;;  %v217_v14 = vld [vmem:[%s347_s2] ss:$0 sm:$0xff] }
   0x7   :  { %v218_v39 = vld [vmem:[%s349_s4] ss:$0 sm:$0xff] }
   0x8   :  { %155 = vmatpush.msra.mxu1 %v109_v12  ;;  %215 = vmatpush.msra.mxu2 %v109_v12 }
   0xa   :  { %156 = vmatpush.msra.mxu1 %v108_v13  ;;  %216 = vmatpush.msra.mxu2 %v108_v13 }
   0xd   :  { %196 = vmatmul.msk.f32.gmra.mxu0 %vm34_vm0, %v21_v5  ;;  %201 = vmatmul.msk.f32.gmra.mxu3 %vm34_vm0, %v26_v6 }
  0x15   :  { %197 = vmatmul.msk.f32.gmra.mxu0 %vm34_vm0, %v22_v7  ;;  %202 = vmatmul.msk.f32.gmra.mxu3 %vm34_vm0, %v27_v8 }
  0x1d   :  { %198 = vmatmul.msk.f32.gmra.mxu0 %vm34_vm0, %v23_v9 }
  0x25   :  { %199 = vmatmul.msk.f32.gmra.mxu0 %vm34_vm0, %v24_v10 }
  0x82   :  { %v76_v15 = vpop.f32.mrf.mxu0 }
  0x83   :  { %v77_v16 = vadd.f32 %v217_v14, %v76_v15 }
  0x85   :  { %v100_v17 = vmax.f32 %v77_v16, 0.0 }
  0x87   :  { %203 = vmatmul.msk.f32.vlgmr.msra.gmra.mxu1 %vm116_vm1, %v100_v17 }
  0x88   :  { %v91_v27 = vpop.f32.mrf.mxu3 }
  0x89   :  { %v92_v31 = vadd.f32 %v217_v14, %v91_v27 }
  0x8a   :  { %v79_v18 = vpop.f32.mrf.mxu0 }
  0x8b   :  { %v80_v19 = vadd.f32 %v217_v14, %v79_v18  ;;  %v105_v33 = vmax.f32 %v92_v31, 0.0 }
  0x8d   :  { %v101_v20 = vmax.f32 %v80_v19, 0.0 }
  0x8f   :  { %204 = vmatmul.msk.f32.gmra.mxu1 %vm116_vm1, %v101_v20 }
  0x90   :  { %v94_v32 = vpop.f32.mrf.mxu3 }
  0x91   :  { %v95_v34 = vadd.f32 %v217_v14, %v94_v32 }
  0x92   :  { %v82_v21 = vpop.f32.mrf.mxu0 }
  0x93   :  { %v83_v22 = vadd.f32 %v217_v14, %v82_v21  ;;  %v106_v35 = vmax.f32 %v95_v34, 0.0 }
  0x95   :  { %v102_v23 = vmax.f32 %v83_v22, 0.0 }
  0x97   :  { %205 = vmatmul.msk.f32.gmra.mxu1 %vm116_vm1, %v102_v23 }
  0x98   :  { %v97_v36 = vpop.f32.mrf.mxu3 }
  0x99   :  { %v98_v37 = vadd.f32 %v217_v14, %v97_v36 }
  0x9a   :  { %v85_v24 = vpop.f32.mrf.mxu0 }
  0x9b   :  { %v86_v25 = vadd.f32 %v217_v14, %v85_v24  ;;  %v107_v38 = vmax.f32 %v98_v37, 0.0 }
  0x9d   :  { %v103_v26 = vmax.f32 %v86_v25, 0.0 }
  0x9f   :  { %206 = vmatmul.msk.f32.gmra.mxu1 %vm116_vm1, %v103_v26 }
  0xa2   :  { %v88_v28 = vpop.f32.mrf.mxu0 }
  0xa3   :  { %v89_v29 = vadd.f32 %v217_v14, %v88_v28 }
  0xa5   :  { %v104_v30 = vmax.f32 %v89_v29, 0.0 }
  0xa7   :  { %207 = vmatmul.msk.f32.vlgmr.msra.gmra.mxu2 %vm116_vm1, %v104_v30 }
  0xaf   :  { %208 = vmatmul.msk.f32.gmra.mxu2 %vm116_vm1, %v105_v33 }
  0xb7   :  { %209 = vmatmul.msk.f32.gmra.mxu2 %vm116_vm1, %v106_v35 }
  0xbf   :  { %210 = vmatmul.msk.f32.gmra.mxu2 %vm116_vm1, %v107_v38 }
 0x104   :  { %v158_v40 = vpop.f32.mrf.mxu1 }
 0x105   :  { %v159_v41 = vadd.f32 %v218_v39, %v158_v40 }
 0x107   :  { %183 = vst.msk [vmem:[%s350_s5] sm:$0xff] %vm182_vm2, %v159_v41 }
 0x10c   :  { %v161_v42 = vpop.f32.mrf.mxu1 }
 0x10d   :  { %v162_v43 = vadd.f32 %v218_v39, %v161_v42 }
 0x10f   :  { %184 = vst.msk [vmem:[%s350_s5 + $0x8] sm:$0xff] %vm182_vm2, %v162_v43 }
 0x114   :  { %v164_v44 = vpop.f32.mrf.mxu1 }
 0x115   :  { %v165_v45 = vadd.f32 %v218_v39, %v164_v44 }
 0x117   :  { %185 = vst.msk [vmem:[%s350_s5 + $0x10] sm:$0xff] %vm182_vm2, %v165_v45 }
 0x11c   :  { %v167_v46 = vpop.f32.mrf.mxu1 }
 0x11d   :  { %v168_v47 = vadd.f32 %v218_v39, %v167_v46 }
 0x11f   :  { %186 = vst.msk [vmem:[%s350_s5 + $0x18] sm:$0xff] %vm182_vm2, %v168_v47 }
 0x12a   :  { %v170_v48 = vpop.f32.mrf.mxu2 }
 0x12b   :  { %v171_v49 = vadd.f32 %v218_v39, %v170_v48 }
 0x12d   :  { %187 = vst.msk [vmem:[%s350_s5 + $0x20] sm:$0xff] %vm182_vm2, %v171_v49 }
 0x132   :  { %v173_v50 = vpop.f32.mrf.mxu2 }
 0x133   :  { %v174_v51 = vadd.f32 %v218_v39, %v173_v50 }
 0x135   :  { %188 = vst.msk [vmem:[%s350_s5 + $0x28] sm:$0xff] %vm182_vm2, %v174_v51 }
 0x13a   :  { %v176_v52 = vpop.f32.mrf.mxu2 }
 0x13b   :  { %v177_v53 = vadd.f32 %v218_v39, %v176_v52 }
 0x13d   :  { %189 = vst.msk [vmem:[%s350_s5 + $0x30] sm:$0xff] %vm182_vm2, %v177_v53 }
 0x142   :  { %v179_v54 = vpop.f32.mrf.mxu2 }
 0x143   :  { %v180_v55 = vadd.f32 %v218_v39, %v179_v54 }
 0x145   :  { %190 = vst.msk [vmem:[%s350_s5 + $0x38] sm:$0xff] %vm182_vm2, %v180_v55 }

</bundles_post_ra>
